<compile_context>
chip_gen: v7x
topology: tpu7x:2x2x1
jax: 0.10.0
libtpu: 0.0.40
codegen_flags: <defaults>
</compile_context>

<pallas_src>
import jax
import jax.numpy as jnp
from jax.experimental import pallas as pl
from jax.experimental.pallas import tpu as pltpu


def _attention_kernel(h_ref, w1_ref, b1_ref, w2_ref, o_ref):
    tb, s_len, hid = h_ref.shape
    h = h_ref[...]                                             # (TB, S, H), native dtype

    # --- First linear + tanh: merge (TB, S) -> TB*S rows for a big-M MXU matmul.
    # (Leading-dim merge with last dim unchanged is a free reshape.)
    h2 = h.reshape(tb * s_len, hid)                            # (TB*S, H), native dtype
    z = jnp.tanh(
        jnp.dot(h2, w1_ref[...], preferred_element_type=jnp.float32)
        + b1_ref[...].astype(jnp.float32)                      # (1, H) broadcast
    )                                                          # (TB*S, H), f32
    z3 = z.reshape(tb, s_len, hid)                             # free leading-dim split
    # TODO(synk): for very large H (>= ~1500 f32) on v7x, tile W1 over an innermost
    # "arbitrary" K grid axis with a VMEM f32 accumulator, and/or pre-cast W1 to bf16
    # outside the kernel, so the weight-resident footprint stays inside 64 MiB VMEM.

    # --- Scores, lane-dense: flash-style batched einsum with q == 1.
    # score[t, s] = z3[t, s, :] . w2   ->  (TB, 1, S) with S on lanes.
    # The +b2 scalar bias is omitted: softmax over seq is shift-invariant.
    w2_q = jnp.broadcast_to(w2_ref[...].astype(jnp.float32).reshape(1, 1, hid),
                            (tb, 1, hid))
    scores = jnp.einsum('bqd,bkd->bqk', w2_q, z3,
                        preferred_element_type=jnp.float32)    # (TB, 1, S)

    # --- Softmax over the sequence (lane) axis. Exact reciprocal: only TB values.
    m = jnp.max(scores, axis=-1, keepdims=True)                # (TB, 1, 1)
    e = jnp.exp(scores - m)                                    # (TB, 1, S)
    inv = 1.0 / jnp.sum(e, axis=-1, keepdims=True)             # (TB, 1, 1)
    p = e * inv                                                # (TB, 1, S), f32

    # --- Weighted sum over the sequence via MXU: (TB,1,S) @ (TB,S,H) -> (TB,1,H).
    att = jnp.einsum('bqk,bkd->bqd', p.astype(h.dtype), h,
                     preferred_element_type=jnp.float32)       # (TB, 1, H)
    o_ref[...] = att.reshape(tb, hid).astype(o_ref.dtype)      # (TB, H)


def _vmem_limit_bytes():
    """Generation-aware VMEM limit (~96 MiB on v5e/v6e, ~48 MiB on v7x)."""
    try:
        cap = pltpu.get_tpu_info().vmem_capacity_bytes
    except Exception:
        cap = 64 * 1024 * 1024          # conservative fallback: v7x per-TC VMEM
    return max(16 * 1024 * 1024, int(cap * 0.75))


def _pick_tb(B, S, H, itemsize, budget_bytes, target_m=1024):
    """Pick batches-per-block so TB*S >= target_m (MXU/HBM occupancy) while the
    real working set (double-buffered blocks + grid-invariant weights + f32
    in-kernel temporaries) fits the budget, keeping the (TB, H) output block
    sublane-legal (TB multiple of 8, or TB == padded batch)."""
    def working_set(t):
        h_blk = 2 * itemsize * t * S * H                 # streamed input, 2 buffers
        o_blk = 2 * itemsize * t * H                     # output, 2 buffers
        wts = 2 * itemsize * (H * H + 2 * H)             # W1/b1/w2 (grid-invariant, 2 bufs)
        f32_tmp = 4 * (t * S * H + 3 * t * S + 2 * t * H)  # z, scores/e/p, att
        return h_blk + o_blk + wts + f32_tmp

    tb = max(1, pl.cdiv(target_m, S))
    while tb > 1 and working_set(tb) > budget_bytes:
        tb -= 1

    if tb >= B:
        if B >= 16:
            # keep >= 2 grid steps so both v7x TensorCores get work
            tb = max(8, 8 * ((B // 2) // 8))
        else:
            return B                    # single full-batch block: out block == full dims
    if tb >= 8:
        tb = (tb // 8) * 8              # sublane-align the (TB, H) output block
    else:
        tb = B if B <= 8 else 8         # round UP; padded rows are sliced off
    return tb


def attention_layer(hidden_states, w1, b1, w2, b2):
    """hidden_states: (B, S, H); w1: (H, H) (in,out); b1: (H,); w2: (H, 1); b2: (1,).

    b2 is accepted for signature fidelity but is not needed inside the kernel:
    softmax over the sequence is invariant to a constant shift of the scores.
    """
    del b2
    B, S, H = hidden_states.shape
    dtype = hidden_states.dtype
    itemsize = jnp.dtype(dtype).itemsize

    vmem_limit = _vmem_limit_bytes()
    tb = _pick_tb(B, S, H, itemsize, budget_bytes=int(0.8 * vmem_limit))
    n_blocks = pl.cdiv(B, tb)
    Bp = n_blocks * tb

    h = hidden_states
    if Bp != B:
        # Zero-padded batches -> uniform softmax over zero values -> zeros; sliced off below.
        h = jnp.pad(h, ((0, Bp - B), (0, 0), (0, 0)))

    b1_2d = b1.reshape(1, H)
    w2_row = w2.reshape(1, H)           # (H,1) column -> (1,H) row (same element order)

    out = pl.pallas_call(
        _attention_kernel,
        out_shape=jax.ShapeDtypeStruct((Bp, H), dtype),
        grid_spec=pltpu.PrefetchScalarGridSpec(
            num_scalar_prefetch=0,
            grid=(n_blocks,),
            in_specs=[
                # TODO(synk): if xprof shows exposed DMA after block enlargement, set
                # pipeline_mode=pl.Buffered(3) on this streamed operand only.
                pl.BlockSpec((tb, S, H), lambda i: (i, 0, 0)),   # hidden_states block
                pl.BlockSpec((H, H), lambda i: (0, 0)),          # W1 (grid-invariant)
                pl.BlockSpec((1, H), lambda i: (0, 0)),          # b1
                pl.BlockSpec((1, H), lambda i: (0, 0)),          # w2 as a row
            ],
            out_specs=pl.BlockSpec((tb, H), lambda i: (i, 0)),
        ),
        compiler_params=pltpu.CompilerParams(
            # Batch-block axis is independent -> shards across both v7x TensorCores.
            dimension_semantics=("parallel",),
            vmem_limit_bytes=vmem_limit,
        ),
    )(h, w1, b1_2d, w2_row)

    return out[:B]


def _reference(hidden_states, w1, b1, w2, b2):
    # Pure-JAX reference matching the PyTorch forward exactly (including b2).
    scores = jnp.tanh(hidden_states @ w1 + b1) @ w2 + b2      # (B, S, 1)
    weights = jax.nn.softmax(scores, axis=1)                   # softmax over seq dim
    return jnp.sum(weights * hidden_states, axis=1)            # (B, H)


if __name__ == "__main__":
    B, S, H = 2, 8, 32

    key = jax.random.PRNGKey(0)
    k_x, k_w1, k_b1, k_w2, k_b2 = jax.random.split(key, 5)

    hidden_states = jax.random.normal(k_x, (B, S, H), dtype=jnp.float32)

    # Deterministic parameter init (shapes match nn.Linear(H,H) and nn.Linear(H,1)).
    # Stored as (in_features, out_features) so the kernel does x @ W + b.
    bound1 = 1.0 / jnp.sqrt(H)
    w1 = jax.random.uniform(k_w1, (H, H), minval=-bound1, maxval=bound1, dtype=jnp.float32)
    b1 = jax.random.uniform(k_b1, (H,), minval=-bound1, maxval=bound1, dtype=jnp.float32)
    w2 = jax.random.uniform(k_w2, (H, 1), minval=-bound1, maxval=bound1, dtype=jnp.float32)
    b2 = jax.random.uniform(k_b2, (1,), minval=-bound1, maxval=bound1, dtype=jnp.float32)

    out = attention_layer(hidden_states, w1, b1, w2, b2)
    out = jax.block_until_ready(out)

    ref = _reference(hidden_states, w1, b1, w2, b2)
    assert out.shape == (B, H)
    assert jnp.allclose(out, ref, atol=1e-4, rtol=1e-4), "mismatch vs reference"

    print("KERNEL_OK")
</pallas_src>

<mosaic_0001>
module attributes {stable_mosaic.version = 11 : i64} {
  func.func @_attention_kernel(%arg0: i32, %arg1: memref<2x8x32xf32, #tpu.memory_space<vmem>>, %arg2: memref<32x32xf32, #tpu.memory_space<vmem>>, %arg3: memref<1x32xf32, #tpu.memory_space<vmem>>, %arg4: memref<1x32xf32, #tpu.memory_space<vmem>>, %arg5: memref<2x32xf32, #tpu.memory_space<vmem>>) attributes {dimension_semantics = [#tpu.dimension_semantics<parallel>], iteration_bounds = array<i64: 1>, scalar_prefetch = 0 : i64, scratch_operands = 0 : i64, tpu.core_type = #tpu.core_type<tc>, window_params = [{transform_indices = @transform_0, window_bounds = array<i64: 2, 8, 32>}, {pipeline_mode = #tpu.pipeline_mode<synchronous>, transform_indices = @transform_1, window_bounds = array<i64: 32, 32>}, {pipeline_mode = #tpu.pipeline_mode<synchronous>, transform_indices = @transform_2, window_bounds = array<i64: 1, 32>}, {pipeline_mode = #tpu.pipeline_mode<synchronous>, transform_indices = @transform_3, window_bounds = array<i64: 1, 32>}, {transform_indices = @transform_4, window_bounds = array<i64: 2, 32>}]} {
    %c0 = arith.constant 0 : index
    %c0_0 = arith.constant 0 : index
    %c0_1 = arith.constant 0 : index
    %0 = vector.load %arg1[%c0, %c0_0, %c0_1] : memref<2x8x32xf32, #tpu.memory_space<vmem>>, vector<2x8x32xf32>
    %1 = vector.shape_cast %0 : vector<2x8x32xf32> to vector<16x32xf32>
    %c0_2 = arith.constant 0 : index
    %c0_3 = arith.constant 0 : index
    %2 = vector.load %arg2[%c0_2, %c0_3] : memref<32x32xf32, #tpu.memory_space<vmem>>, vector<32x32xf32>
    %cst = arith.constant dense<0.000000e+00> : vector<16x32xf32>
    %3 = tpu.matmul %1, %2, %cst {dimension_numbers = #tpu.dot_dimension_numbers<[1], [0], [0], [1], [0, 0, 1, 1], [], []>} : vector<16x32xf32>, vector<32x32xf32>, vector<16x32xf32> -> vector<16x32xf32>
    %c0_4 = arith.constant 0 : index
    %c0_5 = arith.constant 0 : index
    %4 = vector.load %arg3[%c0_4, %c0_5] : memref<1x32xf32, #tpu.memory_space<vmem>>, vector<1x32xf32>
    %5 = vector.broadcast %4 : vector<1x32xf32> to vector<16x32xf32>
    %6 = arith.addf %3, %5 : vector<16x32xf32>
    %7 = math.tanh %6 : vector<16x32xf32>
    %8 = vector.shape_cast %7 : vector<16x32xf32> to vector<2x8x32xf32>
    %c0_6 = arith.constant 0 : index
    %c0_7 = arith.constant 0 : index
    %9 = vector.load %arg4[%c0_6, %c0_7] : memref<1x32xf32, #tpu.memory_space<vmem>>, vector<1x32xf32>
    %10 = vector.shape_cast %9 : vector<1x32xf32> to vector<1x1x32xf32>
    %11 = vector.shape_cast %10 : vector<1x1x32xf32> to vector<1x1x32xf32>
    %12 = vector.broadcast %11 : vector<1x1x32xf32> to vector<2x1x32xf32>
    "tpu.trace_start"() <{level = 10 : i32, message = "bqd,bkd->bqk"}> : () -> ()
    %cst_8 = arith.constant dense<0.000000e+00> : vector<2x1x8xf32>
    %13 = tpu.matmul %12, %8, %cst_8 {dimension_numbers = #tpu.dot_dimension_numbers<[2], [2], [1], [1], [0, 0, 0, 1, 1, 1], [0], [0]>} : vector<2x1x32xf32>, vector<2x8x32xf32>, vector<2x1x8xf32> -> vector<2x1x8xf32>
    "tpu.trace_stop"() : () -> ()
    %cst_9 = arith.constant dense<0xFF800000> : vector<2x1xf32>
    %14 = vector.multi_reduction <maximumf>, %13, %cst_9 [2] : vector<2x1x8xf32> to vector<2x1xf32>
    %15 = vector.shape_cast %14 : vector<2x1xf32> to vector<2x1x1xf32>
    %16 = vector.broadcast %15 : vector<2x1x1xf32> to vector<2x1x8xf32>
    %17 = arith.subf %13, %16 : vector<2x1x8xf32>
    %18 = math.exp %17 : vector<2x1x8xf32>
    %cst_10 = arith.constant dense<0.000000e+00> : vector<2x1xf32>
    %19 = vector.multi_reduction <add>, %18, %cst_10 [2] : vector<2x1x8xf32> to vector<2x1xf32>
    %20 = vector.shape_cast %19 : vector<2x1xf32> to vector<2x1x1xf32>
    %cst_11 = arith.constant 1.000000e+00 : f32
    %21 = vector.broadcast %cst_11 : f32 to vector<2x1x1xf32>
    %22 = arith.divf %21, %20 : vector<2x1x1xf32>
    %23 = vector.broadcast %22 : vector<2x1x1xf32> to vector<2x1x8xf32>
    %24 = arith.mulf %18, %23 : vector<2x1x8xf32>
    "tpu.trace_start"() <{level = 10 : i32, message = "bqk,bkd->bqd"}> : () -> ()
    %cst_12 = arith.constant dense<0.000000e+00> : vector<2x1x32xf32>
    %25 = tpu.matmul %24, %0, %cst_12 {dimension_numbers = #tpu.dot_dimension_numbers<[2], [1], [1], [2], [0, 0, 0, 1, 1, 2], [0], [0]>} : vector<2x1x8xf32>, vector<2x8x32xf32>, vector<2x1x32xf32> -> vector<2x1x32xf32>
    "tpu.trace_stop"() : () -> ()
    %26 = vector.shape_cast %25 : vector<2x1x32xf32> to vector<2x32xf32>
    %c0_13 = arith.constant 0 : index
    %c0_14 = arith.constant 0 : index
    %27 = vector.load %arg5[%c0_13, %c0_14] : memref<2x32xf32, #tpu.memory_space<vmem>>, vector<2x32xf32>
    tpu.vector_store %arg5[%c0_13, %c0_14], %26 {strides = array<i32>} : memref<2x32xf32, #tpu.memory_space<vmem>>, vector<2x32xf32>,
    return
  }
  func.func @transform_0(%arg0: i32) -> (i32, i32, i32) {
    %c0_i32 = arith.constant 0 : i32
    %c0_i32_0 = arith.constant 0 : i32
    %c0_i32_1 = arith.constant 0 : i32
    return %arg0, %c0_i32, %c0_i32_0 : i32, i32, i32
  }
  func.func @transform_1(%arg0: i32) -> (i32, i32) {
    %c0_i32 = arith.constant 0 : i32
    %c0_i32_0 = arith.constant 0 : i32
    %c0_i32_1 = arith.constant 0 : i32
    return %c0_i32, %c0_i32_0 : i32, i32
  }
  func.func @transform_2(%arg0: i32) -> (i32, i32) {
    %c0_i32 = arith.constant 0 : i32
    %c0_i32_0 = arith.constant 0 : i32
    %c0_i32_1 = arith.constant 0 : i32
    return %c0_i32, %c0_i32_0 : i32, i32
  }
  func.func @transform_3(%arg0: i32) -> (i32, i32) {
    %c0_i32 = arith.constant 0 : i32
    %c0_i32_0 = arith.constant 0 : i32
    %c0_i32_1 = arith.constant 0 : i32
    return %c0_i32, %c0_i32_0 : i32, i32
  }
  func.func @transform_4(%arg0: i32) -> (i32, i32) {
    %c0_i32 = arith.constant 0 : i32
    %c0_i32_0 = arith.constant 0 : i32
    return %arg0, %c0_i32 : i32, i32
  }
}

</mosaic_0001>

<bundles_post_ra>
// kernel: tpu_custom_call.1
= control target key start
LH: loop header
LB: loop body
LE: loop exit
PB: predicated region body
PF: predicated region fallthrough
CT: control target
= control target key end

     0   :  { %9 = vsyncpa [#allocation3], 0  ;;  %s730_s0 = inlined_call_operand.hbm [shape: f32[2,8,32], index: 0, kind: input, shape index: {}]   ;;  %s731_s1 = inlined_call_operand.hbm [shape: f32[32,32], index: 1, kind: input, shape index: {}]   ;;  %s732_s2 = inlined_call_operand.vmem [shape: f32[1,32], index: 2, kind: input, shape index: {}]   ;;  %s733_s3 = inlined_call_operand.vmem [shape: f32[1,32], index: 3, kind: input, shape index: {}]   ;;  %s734_s4 = inlined_call_operand.hbm [shape: f32[2,32], index: 4, kind: output, shape index: {}]  }
   0x1   :  { %10 = vsyncpa [#allocation6], 0 }
   0x2   :  { %11 = vsyncpa [#allocation4], 0  ;;  %s642_s15 = smov [#allocation2]   ;;  %s570_s19 = scalar_lea.hbm %s730_s0, 256 }
   0x3   :  { %s17_s16 = sshll.u32 %s642_s15, 4  ;;  %p571_p0 = scmp.ne.s32.totalorder %s730_s0, %s570_s19  ;;  %s18_s16 = int_to_ptr.vmem [resolvable:$true] %s17_s16 }
   0x4   :  { %p574_p1 = scmp.lt.u32.totalorder %s570_s19, %s730_s0 }
   0x6   :  { %p576_p2 = pnand %p574_p1, %p571_p0 }
   0x8   :  { %579 = shalt.err (!%p576_p2)
}
   0x9   :  { %s580_s24 = scalar_lea.vmem %s18_s16, 256  ;;  %p585_p4 = scmp.lt.s32.totalorder %s18_s16, %s18_s16 }
   0xa   :  { %p581_p3 = scmp.ne.s32.totalorder %s18_s16, %s580_s24  ;;  %p586_p5 = scmp.lt.s32.totalorder %s580_s24, %s580_s24 }
   0xc   :  { %p587_p6 = por %p586_p5, %p585_p4 }
   0xe   :  { %p588_p7 = pnand %p587_p6, %p581_p3 }
  0x10   :  { %591 = shalt.err (!%p588_p7)
}
  0x11   :  { %s643_s25 = smov 128   ;;  %s644_s26 = smov 8  }
  0x12   :  { %23 = dma.hbm_to_vmem [thread:$0]  %s730_s0, 256, %s18_s16, [#allocation3], %s643_s25, %s643_s25, %s644_s26  }
  0x13   :  { %s645_s29 = smov [#allocation5]   ;;  %s592_s7 = scalar_lea.hbm %s731_s1, 512 }
  0x14   :  { %s29_s30 = sshll.u32 %s645_s29, 4  ;;  %p593_p8 = scmp.ne.s32.totalorder %s731_s1, %s592_s7  ;;  %s30_s30 = int_to_ptr.vmem [resolvable:$true] %s29_s30 }
  0x15   :  { %p596_p9 = scmp.lt.u32.totalorder %s592_s7, %s731_s1 }
  0x17   :  { %p598_p10 = pnand %p596_p9, %p593_p8 }
  0x19   :  { %601 = shalt.err (!%p598_p10)
}
  0x1a   :  { %s602_s12 = scalar_lea.vmem %s30_s30, 512  ;;  %p607_p12 = scmp.lt.s32.totalorder %s30_s30, %s30_s30 }
  0x1b   :  { %p603_p11 = scmp.ne.s32.totalorder %s30_s30, %s602_s12  ;;  %p608_p13 = scmp.lt.s32.totalorder %s602_s12, %s602_s12 }
  0x1d   :  { %p609_p0 = por %p608_p13, %p607_p12 }
  0x1f   :  { %p610_p1 = pnand %p609_p0, %p603_p11 }
  0x21   :  { %613 = shalt.err (!%p610_p1)
}
  0x22   :  { %35 = dma.hbm_to_vmem [thread:$0]  %s731_s1, 512, %s30_s30, [#allocation6], %s643_s25, %s643_s25, %s644_s26  }
  0x23   :  { %636 = dma.done.wait [#allocation3], 256  }
  0x24   :  { %637 = vsyncadd [#allocation3], 4294967040 }
  0x25   :  { %638 = dma.done.wait [#allocation6], 512  }
  0x26   :  { %639 = vsyncadd [#allocation6], 4294966784  ;;  %vm59_vm0 = vcmask 261120   ;;  %v48_v0 = vld [vmem:[#allocation5] sm:$0xff]  ;;  %v49_v1 = vld [vmem:[#allocation5 + $0x8] sm:$0xff]  ;;  %v646_v8 = vmov 0.0  }
  0x27   :  { %v50_v2 = vld [vmem:[#allocation5 + $0x10] sm:$0xff]  ;;  %v543_v3 = vpack.c.bf16 %v49_v1, %v48_v0  ;;  %v51_v4 = vld [vmem:[#allocation5 + $0x18] sm:$0xff]  ;;  %523 = vmatprep.subr.mxu1 %v646_v8  ;;  %vm647_vm1 = vmmov 0   ;;  %vm293_vm2 = vcmask 57344   ;;  %vm318_vm3 = vcmask 64512  }
  0x28   :  { %v46_v5 = vld [vmem:[#allocation2] sm:$0xff]  ;;  %v547_v6 = vpack.c.bf16 %v51_v4, %v50_v2  ;;  %v47_v7 = vld [vmem:[#allocation2 + $0x8] sm:$0xff]  ;;  %525 = vmatprep.mubr.msk.f32.mxu1 %vm647_vm1, %v646_v8  ;;  %vm468_vm4 = vcmask 1041409   ;;  %vm471_vm5 = vcmask 254976  }
  0x29   :  { %520 = vmatprep.mubr.msk.f32.mxu0 %vm59_vm0, %v46_v5  ;;  %544 = vmatprep.subr.bf16.mxu0 %v543_v3  ;;  %v489_v9 = vld [vmem:[%s732_s2] ss:$0 sm:$0xff]  ;;  %s648_s2 = smov [#allocation7]  }
  0x2a   :  { %546 = vmatpush3.bf16.msra.mxu0 %v543_v3  ;;  %v143_v15 = vld [vmem:[%s733_s3] sm:$0x1]  ;;  %s479_s3 = sshll.u32 %s648_s2, 4  ;;  %s480_s3 = int_to_ptr.vmem [resolvable:$true] %s479_s3 }
  0x2b   :  { %548 = vmatprep.subr.bf16.mxu0 %v547_v6  ;;  %s614_s17 = scalar_lea.vmem %s480_s3, 32  ;;  %p619_p3 = scmp.lt.s32.totalorder %s480_s3, %s480_s3 }
  0x2c   :  { %p615_p2 = scmp.ne.s32.totalorder %s480_s3, %s614_s17  ;;  %p620_p4 = scmp.lt.s32.totalorder %s614_s17, %s614_s17 }
  0x2e   :  { %550 = vmatpush3.bf16.msra.mxu0 %v547_v6  ;;  %p621_p5 = por %p620_p4, %p619_p3 }
  0x2f   :  { %533 = vmatprep.subr.mxu0 %v646_v8 }
  0x30   :  { %p622_p6 = pnand %p621_p5, %p615_p2 }
  0x31   :  { %521 = vmatmul.mubr.msk.f32.vlgmr.msra.gmra.mrb[0].mxu0 %vm59_vm0, %v47_v7 }
  0x32   :  { %534 = vmatpush3.msra.mxu0 %v46_v5  ;;  %535 = vmatprep.mubr.msk.f32.mxu0 %vm647_vm1, %v646_v8 }
 0x104   :  { %v522_v10 = vpop.f32.mrb[0].mxu0 }
 0x105   :  { %v132_v11 = vpop.f32.mrb[1].mxu0  ;;  %v138_v13 = vadd.f32 %v522_v10, %v489_v9 }
 0x106   :  { %v133_v12 = vadd.f32 %v489_v9, %v132_v11 }
 0x108   :  { %558 = vtanh.f32 %v133_v12 }
 0x109   :  { %560 = vtanh.f32 %v138_v13 }
 0x112   :  { %v559_v14 = vpop.eup %558 }
 0x113   :  { %524 = vmatpush3.xpose.msk.msra.mxu1 %vm59_vm0, %v559_v14  ;;  %v561_v16 = vpop.eup %560 }
 0x114   :  { %528 = vmatprep.subr.mxu1 %v646_v8 }
 0x116   :  { %526 = vmatmul.mubr.msk.f32.vlgmr.msra.gmra.mrb[0].mxu1 %vm59_vm0, %v143_v15 }
 0x117   :  { %529 = vmatpush3.xpose.msk.msra.mxu1 %vm59_vm0, %v561_v16  ;;  %530 = vmatprep.mubr.msk.f32.mxu1 %vm647_vm1, %v646_v8 }
 0x118   :  { %538 = vmatprep.subr.mxu1 %v646_v8 }
 0x11a   :  { %531 = vmatmul.mubr.msk.f32.vlgmr.msra.gmra.mrb[2].mxu1 %vm59_vm0, %v143_v15 }
 0x11b   :  { %539 = vmatpush3.msra.mxu1 %v47_v7  ;;  %540 = vmatprep.mubr.msk.f32.mxu1 %vm647_vm1, %v646_v8 }
 0x1e9   :  { %v216_v17 = vpop.f32.mrb[0].mxu1 }
 0x1ea   :  { %v527_v18 = vpop.f32.mrb[1].mxu1  ;;  %v294_v22 = vsel %vm293_vm2, %v216_v17, -inf }
 0x1ed   :  { %v289_v19 = vpop.f32.mrb[2].mxu1 }
 0x1ee   :  { %v532_v20 = vpop.f32.mrb[3].mxu1  ;;  %v297_v21 = vsel %vm293_vm2, %v289_v19, -inf }
 0x1ef   :  { %298 = vmax.xlane.f32.xlu0 %v297_v21 }
 0x1f3   :  { %295 = vmax.xlane.f32.xlu0 %v294_v22 }
 0x27c   :  { %v299_v23 = vpop.xlane.xlu0 %298 }
 0x27d   :  { %v301_v24 = vsub.f32 %v289_v19, %v299_v23 }
 0x27f   :  { %v304_v25 = vmul.f32 1.442695, %v301_v24 }
 0x280   :  { %v296_v26 = vpop.xlane.xlu0 %295 }
 0x281   :  { %562 = vpow2.f32 %v304_v25  ;;  %v300_v27 = vsub.f32 %v216_v17, %v296_v26 }
 0x283   :  { %v302_v28 = vmul.f32 1.442695, %v300_v27 }
 0x285   :  { %564 = vpow2.f32 %v302_v28 }
 0x28b   :  { %v563_v29 = vpop.eup %562 }
 0x28c   :  { %v309_v30 = vsel %vm293_vm2, %v563_v29, 0.0 }
 0x28d   :  { %310 = vadd.xlane.f32.xlu1 %v309_v30 }
 0x28f   :  { %v565_v31 = vpop.eup %564 }
 0x290   :  { %v306_v32 = vsel %vm293_vm2, %v565_v31, 0.0 }
 0x291   :  { %307 = vadd.xlane.f32.xlu1 %v306_v32 }
 0x31a   :  { %v311_v33 = vpop.xlane.xlu1 %310 }
 0x31b   :  { %566 = vrcp.f32 %v311_v33 }
 0x31e   :  { %v308_v34 = vpop.xlane.xlu1 %307 }
 0x31f   :  { %568 = vrcp.f32 %v308_v34 }
 0x325   :  { %v567_v35 = vpop.eup %566 }
 0x326   :  { %v317_v36 = vmul.f32 %v567_v35, %v563_v29 }
 0x328   :  { %541 = vmatmul.mubr.msk.f32.vlgmr.msra.gmra.mrb[4].mxu1 %vm318_vm3, %v317_v36 }
 0x329   :  { %v569_v37 = vpop.eup %568 }
 0x32a   :  { %v316_v38 = vmul.f32 %v569_v37, %v565_v31 }
 0x32c   :  { %536 = vmatmul.mubr.msk.f32.vlgmr.msra.gmra.mrb[2].mxu0 %vm318_vm3, %v316_v38 }
 0x3fb   :  { %v461_v39 = vpop.f32.mrb[4].mxu1 }
 0x3fc   :  { %v542_v40 = vpop.f32.mrb[5].mxu1  ;;  %v467_v41 = vrot.slane %v461_v39, 7 }
 0x3ff   :  { %v388_v42 = vpop.f32.mrb[2].mxu0 }
 0x400   :  { %v469_v43 = vsel %vm468_vm4, %v467_v41, %v388_v42  ;;  %v537_v44 = vpop.f32.mrb[3].mxu0 }
 0x401   :  { %472 = vst.msk [vmem:[#allocation7] sm:$0x3] %vm471_vm5, %v469_v43 }
 0x402   :  { %625 = shalt.err (!%p622_p6)
}
 0x403   :  { %s626_s20 = scalar_lea.hbm %s734_s4, 32 }
 0x404   :  { %p627_p7 = scmp.ne.s32.totalorder %s734_s4, %s626_s20  ;;  %p630_p8 = scmp.lt.u32.totalorder %s626_s20, %s734_s4 }
 0x406   :  { %p632_p9 = pnand %p630_p8, %p627_p7 }
 0x408   :  { %635 = shalt.err (!%p632_p9)
}
 0x409   :  { %482 = dma.vmem_to_hbm [thread:$0]  %s480_s3, 32, %s734_s4, [#allocation4]  }
 0x40a   :  { %640 = dma.done.wait [#allocation4], 32  }
 0x40b   :  { %641 = vsyncadd [#allocation4], 4294967264 }
 0x40c   :  { %486 = vsyncpa [#allocation3], 1 }
 0x40d   :  { %487 = vsyncpa [#allocation6], 1 }
 0x40e   :  { %488 = vsyncpa [#allocation4], 1 }

</bundles_post_ra>
